<compile_context>
chip_gen: v6e
topology: v6e:2x2x1
jax: 0.10.0
libtpu: 0.0.40
codegen_flags: <defaults>
</compile_context>

<pallas_src>
import jax
import jax.numpy as jnp
from jax.experimental import pallas as pl
from jax.experimental.pallas import tpu as pltpu


def _ddpm_forward_kernel(sa_ref, sb_ref, x_ref, eta_ref, out_ref):
    # sa_ref / sb_ref: (TILE_ROWS, 1) f32 per-sample scales (lane-broadcast)
    # x_ref / eta_ref / out_ref: (TILE_ROWS, TILE_LANES) tiles
    out_ref[...] = (
        sa_ref[...] * x_ref[...] + sb_ref[...] * eta_ref[...]
    ).astype(out_ref.dtype)


def make_ddpm_params(n_steps=200, min_beta=1e-4, max_beta=0.02):
    betas = jnp.linspace(min_beta, max_beta, n_steps, dtype=jnp.float32)
    alphas = 1.0 - betas
    alpha_bars = jnp.cumprod(alphas)  # alpha_bars[i] = prod(alphas[:i+1])
    return betas, alphas, alpha_bars


def _choose_tiles(n_rows, n_lanes, itemsize, target_bytes=2 * 1024 * 1024):
    """Pick a (rows, lanes) block of ~target_bytes obeying the (8,128) rule.

    Sublane dim is a multiple of 8 or the full row count; lane dim is either
    the full lane width (exempt from the rule) or a multiple of 128.
    """
    total_bytes = n_rows * n_lanes * itemsize
    row_bytes = n_lanes * itemsize
    if total_bytes <= target_bytes:
        # Whole array fits in a single block.
        return n_rows, n_lanes
    if 8 * row_bytes <= target_bytes:
        # Keep the full lane width; tile rows in multiples of 8.  (n_rows >= 8
        # here, otherwise the whole array would have fit above.)
        tile_rows = (target_bytes // row_bytes) // 8 * 8
        tile_rows = max(8, min(tile_rows, (n_rows // 8) * 8))
        return tile_rows, n_lanes
    # A single group of 8 rows exceeds the budget: tile the lane dim too.
    tile_rows = n_rows if n_rows < 8 else 8
    tile_lanes = max(128, (target_bytes // (tile_rows * itemsize)) // 128 * 128)
    tile_lanes = min(tile_lanes, max(128, (n_lanes // 128) * 128))
    return tile_rows, tile_lanes


def ddpm_forward(x0, t, eta, alpha_bars):
    """Pallas implementation of MyDDPM.forward.

    x0, eta:    (n, c, h, w) float arrays (NCHW, as in PyTorch)
    t:          (n,) int timestep indices
    alpha_bars: (n_steps,) float32 noise schedule
    """
    n, c, h, w = x0.shape
    chw = c * h * w

    # Lane-dense 2-D view: batch on sublanes, c*h*w on lanes.
    x_flat = x0.reshape(n, chw)
    eta_flat = eta.reshape(n, chw)

    # Hoisted per-sample scalar work (gather + sqrt) — negligible XLA ops.
    n_steps = alpha_bars.shape[0]
    t_idx = jnp.clip(t.astype(jnp.int32), 0, n_steps - 1)   # no silent OOB read
    a_bar = alpha_bars[t_idx].astype(jnp.float32)
    sa = jnp.sqrt(a_bar).reshape(n, 1)
    sb = jnp.sqrt(1.0 - a_bar).reshape(n, 1)

    itemsize = jnp.dtype(x0.dtype).itemsize
    tile_rows, tile_lanes = _choose_tiles(n, chw, itemsize)
    grid = (pl.cdiv(n, tile_rows), pl.cdiv(chw, tile_lanes))

    grid_spec = pltpu.PrefetchScalarGridSpec(
        num_scalar_prefetch=0,
        grid=grid,
        in_specs=[
            pl.BlockSpec((tile_rows, 1), lambda i, j: (i, 0)),           # sa
            pl.BlockSpec((tile_rows, 1), lambda i, j: (i, 0)),           # sb
            pl.BlockSpec((tile_rows, tile_lanes), lambda i, j: (i, j)),  # x0
            pl.BlockSpec((tile_rows, tile_lanes), lambda i, j: (i, j)),  # eta
        ],
        out_specs=pl.BlockSpec((tile_rows, tile_lanes), lambda i, j: (i, j)),
    )

    total_elems = n * chw
    cost = pl.CostEstimate(
        flops=2 * total_elems,                      # 2 mul + 1 add ~ 2 fused
        transcendentals=0,
        bytes_accessed=3 * total_elems * itemsize,  # x0 + eta in, noisy out
    )

    noisy_flat = pl.pallas_call(
        _ddpm_forward_kernel,
        out_shape=jax.ShapeDtypeStruct((n, chw), x0.dtype),
        grid_spec=grid_spec,
        compiler_params=pltpu.CompilerParams(
            # Pure elementwise stream: every grid axis is independent, so the
            # v7x megacore can shard both axes across its TensorCores.
            dimension_semantics=("parallel", "parallel"),
        ),
        cost_estimate=cost,
    )(sa, sb, x_flat, eta_flat)

    return noisy_flat.reshape(n, c, h, w)


def _reference_forward(x0, t, eta, alpha_bars):
    n = x0.shape[0]
    a_bar = alpha_bars[t]
    return (jnp.sqrt(a_bar).reshape(n, 1, 1, 1) * x0
            + jnp.sqrt(1.0 - a_bar).reshape(n, 1, 1, 1) * eta)


if __name__ == "__main__":
    key = jax.random.PRNGKey(0)
    n_steps = 200
    _, _, alpha_bars = make_ddpm_params(n_steps)

    # Shapes consistent with the module: default image_chw=(1, 20, 200) plus a
    # second small NCHW case.
    test_shapes = [(2, 1, 20, 200), (2, 4, 16, 16)]

    for shape in test_shapes:
        n, c, h, w = shape
        key, k_x, k_eta, k_t = jax.random.split(key, 4)
        x0 = jax.random.normal(k_x, shape, dtype=jnp.float32)
        eta = jax.random.normal(k_eta, shape, dtype=jnp.float32)
        t = jax.random.randint(k_t, (n,), 0, n_steps, dtype=jnp.int32)

        noisy = ddpm_forward(x0, t, eta, alpha_bars)
        noisy = jax.block_until_ready(noisy)

        ref = _reference_forward(x0, t, eta, alpha_bars)
        assert noisy.shape == shape
        assert jnp.allclose(noisy, ref, atol=1e-6, rtol=1e-6)

    # TODO(synk): MyDDPM.backward just delegates to an arbitrary `network`
    # module (not defined in the spec), so it is not translated.
    print("KERNEL_OK")
</pallas_src>

<mosaic_0001>
module attributes {stable_mosaic.version = 11 : i64} {
  func.func @_ddpm_forward_kernel(%arg0: i32, %arg1: i32, %arg2: memref<2x1xf32, #tpu.memory_space<vmem>>, %arg3: memref<2x1xf32, #tpu.memory_space<vmem>>, %arg4: memref<2x4000xf32, #tpu.memory_space<vmem>>, %arg5: memref<2x4000xf32, #tpu.memory_space<vmem>>, %arg6: memref<2x4000xf32, #tpu.memory_space<vmem>>) attributes {dimension_semantics = [#tpu.dimension_semantics<parallel>, #tpu.dimension_semantics<parallel>], iteration_bounds = array<i64: 1, 1>, scalar_prefetch = 0 : i64, scratch_operands = 0 : i64, tpu.core_type = #tpu.core_type<tc>, window_params = [{transform_indices = @transform_0, window_bounds = array<i64: 2, 1>}, {transform_indices = @transform_1, window_bounds = array<i64: 2, 1>}, {transform_indices = @transform_2, window_bounds = array<i64: 2, 4000>}, {transform_indices = @transform_3, window_bounds = array<i64: 2, 4000>}, {transform_indices = @transform_4, window_bounds = array<i64: 2, 4000>}]} {
    %c0 = arith.constant 0 : index
    %c0_0 = arith.constant 0 : index
    %0 = vector.load %arg2[%c0, %c0_0] : memref<2x1xf32, #tpu.memory_space<vmem>>, vector<2x1xf32>
    %c0_1 = arith.constant 0 : index
    %c0_2 = arith.constant 0 : index
    %1 = vector.load %arg4[%c0_1, %c0_2] : memref<2x4000xf32, #tpu.memory_space<vmem>>, vector<2x4000xf32>
    %2 = vector.broadcast %0 : vector<2x1xf32> to vector<2x4000xf32>
    %3 = arith.mulf %2, %1 : vector<2x4000xf32>
    %c0_3 = arith.constant 0 : index
    %c0_4 = arith.constant 0 : index
    %4 = vector.load %arg3[%c0_3, %c0_4] : memref<2x1xf32, #tpu.memory_space<vmem>>, vector<2x1xf32>
    %c0_5 = arith.constant 0 : index
    %c0_6 = arith.constant 0 : index
    %5 = vector.load %arg5[%c0_5, %c0_6] : memref<2x4000xf32, #tpu.memory_space<vmem>>, vector<2x4000xf32>
    %6 = vector.broadcast %4 : vector<2x1xf32> to vector<2x4000xf32>
    %7 = arith.mulf %6, %5 : vector<2x4000xf32>
    %8 = arith.addf %3, %7 : vector<2x4000xf32>
    %c0_7 = arith.constant 0 : index
    %c0_8 = arith.constant 0 : index
    %9 = vector.load %arg6[%c0_7, %c0_8] : memref<2x4000xf32, #tpu.memory_space<vmem>>, vector<2x4000xf32>
    tpu.vector_store %arg6[%c0_7, %c0_8], %8 {strides = array<i32>} : memref<2x4000xf32, #tpu.memory_space<vmem>>, vector<2x4000xf32>,
    return
  }
  func.func @transform_0(%arg0: i32, %arg1: i32) -> (i32, i32) {
    %c0_i32 = arith.constant 0 : i32
    %c0_i32_0 = arith.constant 0 : i32
    return %arg0, %c0_i32 : i32, i32
  }
  func.func @transform_1(%arg0: i32, %arg1: i32) -> (i32, i32) {
    %c0_i32 = arith.constant 0 : i32
    %c0_i32_0 = arith.constant 0 : i32
    return %arg0, %c0_i32 : i32, i32
  }
  func.func @transform_2(%arg0: i32, %arg1: i32) -> (i32, i32) {
    %c0_i32 = arith.constant 0 : i32
    return %arg0, %arg1 : i32, i32
  }
  func.func @transform_3(%arg0: i32, %arg1: i32) -> (i32, i32) {
    %c0_i32 = arith.constant 0 : i32
    return %arg0, %arg1 : i32, i32
  }
  func.func @transform_4(%arg0: i32, %arg1: i32) -> (i32, i32) {
    %c0_i32 = arith.constant 0 : i32
    return %arg0, %arg1 : i32, i32
  }
}

</mosaic_0001>

<bundles_post_ra>
// kernel: tpu_custom_call.1
= control target key start
LH: loop header
LB: loop body
LE: loop exit
PB: predicated region body
PF: predicated region fallthrough
CT: control target
= control target key end

     0   :  { %9 = vsyncpa [#allocation3], 0  ;;  %s1231_s0 = inlined_call_operand.vmem [shape: f32[2,1], index: 0, kind: input, shape index: {}]   ;;  %s1232_s1 = inlined_call_operand.vmem [shape: f32[2,1], index: 1, kind: input, shape index: {}]   ;;  %s1233_s2 = inlined_call_operand.hbm [shape: f32[2,4000], index: 2, kind: input, shape index: {}]   ;;  %s1234_s3 = inlined_call_operand.hbm [shape: f32[2,4000], index: 3, kind: input, shape index: {}]   ;;  %s1235_s4 = inlined_call_operand.hbm [shape: f32[2,4000], index: 4, kind: output, shape index: {}]  }
   0x1   :  { %10 = vsyncpa [#allocation6], 0 }
   0x2   :  { %11 = vsyncpa [#allocation4], 0  ;;  %s813_s15 = smov [#allocation2]   ;;  %s814_s17 = smov [#allocation5]  }
   0x3   :  { %s22_s16 = sshll.u32 %s813_s15, 4  ;;  %s32_s18 = sshll.u32 %s814_s17, 4  ;;  %s23_s16 = int_to_ptr.vmem [resolvable:$true] %s22_s16  ;;  %s33_s18 = int_to_ptr.vmem [resolvable:$true] %s32_s18 }
   0x4   :  { %s755_s19 = scalar_lea.vmem %s23_s16, 1024  ;;  %p760_p1 = scmp.lt.s32.totalorder %s23_s16, %s23_s16 }
   0x5   :  { %p756_p0 = scmp.ne.s32.totalorder %s23_s16, %s755_s19  ;;  %p761_p2 = scmp.lt.s32.totalorder %s755_s19, %s755_s19 }
   0x7   :  { %p762_p3 = por %p761_p2, %p760_p1 }
   0x9   :  { %p763_p4 = pnand %p762_p3, %p756_p0 }
   0xb   :  { %766 = shalt.err (!%p763_p4)
}
   0xc   :  { %25 = dma.hbm_to_vmem [thread:$0]  %s1233_s2, 1024, %s23_s16, [#allocation3]  }
   0xd   :  { %s775_s22 = scalar_lea.vmem %s33_s18, 1024  ;;  %p780_p6 = scmp.lt.s32.totalorder %s33_s18, %s33_s18 }
   0xe   :  { %p776_p5 = scmp.ne.s32.totalorder %s33_s18, %s775_s22  ;;  %p781_p7 = scmp.lt.s32.totalorder %s775_s22, %s775_s22 }
  0x10   :  { %p782_p8 = por %p781_p7, %p780_p6 }
  0x12   :  { %p783_p9 = pnand %p782_p8, %p776_p5 }
  0x14   :  { %786 = shalt.err (!%p783_p9)
}
  0x15   :  { %35 = dma.hbm_to_vmem [thread:$0]  %s1234_s3, 1024, %s33_s18, [#allocation6]  }
  0x16   :  { %807 = dma.done.wait [#allocation3], 1024  }
  0x17   :  { %808 = vsyncadd [#allocation3], 4294966272 }
  0x18   :  { %809 = dma.done.wait [#allocation6], 1024  }
  0x19   :  { %810 = vsyncadd [#allocation6], 4294966272  ;;  %v815_v0 = vmov 0   ;;  %v42_v1 = vld [vmem:[%s1231_s0] sm:$0x3]  ;;  %v68_v5 = vlaneseq  ;;  %v44_v9 = vld [vmem:[#allocation2 + $0x8] sm:$0xff] }
  0x1a   :  { %730 = vset.pattern.permute.xlu0 %v815_v0  ;;  %v264_v2 = vld [vmem:[%s1232_s1] sm:$0x3]  ;;  %v816_v3 = vmov 1983009808   ;;  %v45_v10 = vld [vmem:[#allocation2 + $0x10] sm:$0xff]  ;;  %v46_v11 = vld [vmem:[#allocation2 + $0x18] sm:$0xff]  ;;  %v81_v16 = vcombine.high %v44_v9, %v44_v9 }
  0x1b   :  { %53 = vperm.xlu0 %730, %v42_v1   ;;  %v66_v4 = vunpack.c.l.s4 %v816_v3  ;;  %v69_v7 = vshrl.u32 %v68_v5, 7  ;;  %v43_v8 = vld [vmem:[#allocation2] sm:$0xff]  ;;  %v48_v15 = vld [vmem:[#allocation2 + $0x28] sm:$0xff]  ;;  %v49_v17 = vld [vmem:[#allocation2 + $0x30] sm:$0xff]  ;;  %v98_v18 = vcombine.high %v45_v10, %v45_v10  ;;  %v115_v19 = vcombine.high %v46_v11, %v46_v11  ;;  %s817_s0 = smov [#allocation7]  }
  0x1c   :  { %v47_v13 = vld [vmem:[#allocation2 + $0x20] sm:$0xff]  ;;  %v64_v14 = vcombine.high %v43_v8, %v43_v8  ;;  %v50_v23 = vld [vmem:[#allocation2 + $0x38] sm:$0xff]  ;;  %v149_v26 = vcombine.high %v48_v15, %v48_v15  ;;  %v166_v29 = vcombine.high %v49_v17, %v49_v17  ;;  %v266_v42 = vld [vmem:[#allocation5 + $0x8] sm:$0xff]  ;;  %vm701_vm0 = vcmask 1041408   ;;  %s715_s1 = sshll.u32 %s817_s0, 4  ;;  %s716_s1 = int_to_ptr.vmem [resolvable:$true] %s715_s1 }
  0x1d   :  { %v67_v6 = vunpack.c.0.s8 %v66_v4  ;;  %v132_v22 = vcombine.high %v47_v13, %v47_v13  ;;  %v183_v36 = vcombine.high %v50_v23, %v50_v23  ;;  %v265_v41 = vld [vmem:[#allocation5] sm:$0xff]  ;;  %v267_v47 = vld [vmem:[#allocation5 + $0x10] sm:$0xff]  ;;  %v268_v48 = vld [vmem:[#allocation5 + $0x18] sm:$0xff]  ;;  %v303_v60 = vcombine.high %v266_v42, %v266_v42  ;;  %s787_s3 = scalar_lea.vmem %s716_s1, 1024  ;;  %p792_p11 = scmp.lt.s32.totalorder %s716_s1, %s716_s1 }
  0x1e   :  { %v269_v53 = vld [vmem:[#allocation5 + $0x20] sm:$0xff]  ;;  %v270_v54 = vld [vmem:[#allocation5 + $0x28] sm:$0xff]  ;;  %v271_v57 = vld [vmem:[#allocation5 + $0x30] sm:$0xff]  ;;  %v286_v59 = vcombine.high %v265_v41, %v265_v41  ;;  %v320_v63 = vcombine.high %v267_v47, %v267_v47  ;;  %v337_v0 = vcombine.high %v268_v48, %v268_v48  ;;  %vm702_vm1 = vcmask 1043458   ;;  %p788_p10 = scmp.ne.s32.totalorder %s716_s1, %s787_s3  ;;  %p793_p12 = scmp.lt.s32.totalorder %s787_s3, %s787_s3 }
  0x1f   :  { %275 = vperm.xlu0 %730, %v264_v2   ;;  %v855_v12 = vsub.s32 %v67_v6, %v69_v7  ;;  %v272_v58 = vld [vmem:[#allocation5 + $0x38] sm:$0xff]  ;;  %v354_v3 = vcombine.high %v269_v53, %v269_v53  ;;  %v371_v4 = vcombine.high %v270_v54, %v270_v54  ;;  %v388_v7 = vcombine.high %v271_v57, %v271_v57  ;;  %vm1212_vm4 = vmor %vm702_vm1, %vm701_vm0 }
  0x20   :  { %vm704_vm2 = vcmask 1045508   ;;  %vm706_vm3 = vcmask 261126   ;;  %p794_p13 = por %p793_p12, %p792_p11 }
  0x21   :  { %1238 = vst [vmem:[#allocation11_spill] sm:$0xff] %v855_v12  ;;  %v858_v20 = vrot.slane %v43_v8, %v855_v12  ;;  %v861_v21 = vrot.slane %v44_v9, %v855_v12  ;;  %v864_v24 = vrot.slane %v64_v14, %v855_v12  ;;  %v867_v25 = vrot.slane %v45_v10, %v855_v12  ;;  %vm705_vm5 = vmor %vm704_vm2, %vm1212_vm4 }
  0x22   :  { %v870_v27 = vrot.slane %v81_v16, %v855_v12  ;;  %v873_v28 = vrot.slane %v46_v11, %v855_v12  ;;  %v876_v30 = vrot.slane %v98_v18, %v855_v12  ;;  %v879_v31 = vrot.slane %v115_v19, %v855_v12  ;;  %vm707_vm6 = vmor %vm706_vm3, %vm705_vm5  ;;  %p795_p0 = pnand %p794_p13, %p788_p10 }
  0x23   :  { %v882_v32 = vrot.slane %v47_v13, %v855_v12  ;;  %v79_v33 = vcombine.high %v858_v20, %v858_v20  ;;  %v96_v34 = vcombine.high %v861_v21, %v861_v21  ;;  %v889_v35 = vrot.slane %v132_v22, %v855_v12 }
  0x24   :  { %v80_v37 = vcombine.high %v864_v24, %v864_v24  ;;  %v113_v38 = vcombine.high %v867_v25, %v867_v25  ;;  %v896_v39 = vrot.slane %v48_v15, %v855_v12  ;;  %v899_v40 = vrot.slane %v149_v26, %v855_v12 }
  0x25   :  { %v97_v43 = vcombine.high %v870_v27, %v870_v27  ;;  %v130_v44 = vcombine.high %v873_v28, %v873_v28  ;;  %v906_v45 = vrot.slane %v49_v17, %v855_v12  ;;  %v909_v46 = vrot.slane %v166_v29, %v855_v12 }
  0x26   :  { %v114_v49 = vcombine.high %v876_v30, %v876_v30  ;;  %v131_v50 = vcombine.high %v879_v31, %v879_v31  ;;  %v147_v51 = vcombine.high %v882_v32, %v882_v32  ;;  %v918_v52 = vrot.slane %v50_v23, %v855_v12 }
  0x27   :  { %v148_v55 = vcombine.high %v889_v35, %v889_v35  ;;  %v923_v56 = vrot.slane %v183_v36, %v855_v12  ;;  %v936_v6 = vrot.slane %v265_v41, %v855_v12  ;;  %v405_v8 = vcombine.high %v272_v58, %v272_v58 }
  0x28   :  { %v941_v10 = vrot.slane %v286_v59, %v855_v12  ;;  %v944_v11 = vrot.slane %v266_v42, %v855_v12  ;;  %v947_v13 = vrot.slane %v303_v60, %v855_v12  ;;  %v950_v14 = vrot.slane %v267_v47, %v855_v12 }
  0x29   :  { %v953_v15 = vrot.slane %v320_v63, %v855_v12  ;;  %v956_v16 = vrot.slane %v268_v48, %v855_v12  ;;  %v959_v17 = vrot.slane %v337_v0, %v855_v12  ;;  %v962_v18 = vrot.slane %v269_v53, %v855_v12 }
  0x2a   :  { %v965_v19 = vrot.slane %v354_v3, %v855_v12  ;;  %v968_v22 = vrot.slane %v270_v54, %v855_v12  ;;  %v971_v23 = vrot.slane %v371_v4, %v855_v12  ;;  %v974_v26 = vrot.slane %v271_v57, %v855_v12 }
  0x2b   :  { %v977_v29 = vrot.slane %v388_v7, %v855_v12  ;;  %v980_v36 = vrot.slane %v272_v58, %v855_v12  ;;  %v983_v41 = vrot.slane %v405_v8, %v855_v12  ;;  %v301_v42 = vcombine.high %v936_v6, %v936_v6 }
  0x2c   :  { %v302_v47 = vcombine.high %v941_v10, %v941_v10  ;;  %v318_v48 = vcombine.high %v944_v11, %v944_v11  ;;  %v319_v53 = vcombine.high %v947_v13, %v947_v13  ;;  %v335_v54 = vcombine.high %v950_v14, %v950_v14 }
  0x2d   :  { %v336_v57 = vcombine.high %v953_v15, %v953_v15  ;;  %v352_v58 = vcombine.high %v956_v16, %v956_v16  ;;  %v353_v59 = vcombine.high %v959_v17, %v959_v17  ;;  %v369_v60 = vcombine.high %v962_v18, %v962_v18 }
  0x2e   :  { %v370_v63 = vcombine.high %v965_v19, %v965_v19  ;;  %v386_v0 = vcombine.high %v968_v22, %v968_v22  ;;  %v387_v3 = vcombine.high %v971_v23, %v971_v23  ;;  %v403_v7 = vcombine.high %v974_v26, %v974_v26 }
  0x96   :  { %v54_v4 = vpop.permute.xlu0 %53 }
  0x97   :  { %v1018_v2 = vmul.f32 %v858_v20, %v54_v4  ;;  %v1023_v1 = vmul.f32 %v79_v33, %v54_v4  ;;  %v1026_v62 = vmul.f32 %v864_v24, %v54_v4  ;;  %v1031_v8 = vmul.f32 %v80_v37, %v54_v4 }
  0x98   :  { %v1034_v9 = vmul.f32 %v861_v21, %v54_v4  ;;  %v1039_v5 = vmul.f32 %v96_v34, %v54_v4  ;;  %v1042_v20 = vmul.f32 %v870_v27, %v54_v4  ;;  %v1047_v33 = vmul.f32 %v97_v43, %v54_v4 }
  0x99   :  { %v1050_v24 = vmul.f32 %v867_v25, %v54_v4  ;;  %v1055_v37 = vmul.f32 %v113_v38, %v54_v4  ;;  %v1058_v21 = vmul.f32 %v876_v30, %v54_v4  ;;  %v1063_v34 = vmul.f32 %v114_v49, %v54_v4 }
  0x9a   :  { %v1066_v27 = vmul.f32 %v873_v28, %v54_v4  ;;  %v1071_v43 = vmul.f32 %v130_v44, %v54_v4  ;;  %v1074_v25 = vmul.f32 %v879_v31, %v54_v4  ;;  %v1079_v38 = vmul.f32 %v131_v50, %v54_v4  ;;  %v276_v61 = vpop.permute.xlu0 %275 }
  0x9b   :  { %v1082_v30 = vmul.f32 %v882_v32, %v54_v4  ;;  %v1087_v49 = vmul.f32 %v147_v51, %v54_v4  ;;  %v1090_v28 = vmul.f32 %v889_v35, %v54_v4  ;;  %v1095_v44 = vmul.f32 %v148_v55, %v54_v4 }
  0x9c   :  { %v1098_v31 = vmul.f32 %v896_v39, %v54_v4  ;;  %v1241_v50 = vcombine.high %v896_v39, %v896_v39  ;;  %v1106_v32 = vmul.f32 %v899_v40, %v54_v4  ;;  %v1244_v51 = vcombine.high %v899_v40, %v899_v40 }
  0x9d   :  { %1239 = vst [vmem:[#allocation12_spill] sm:$0xff] %v1090_v28  ;;  %v1114_v35 = vmul.f32 %v906_v45, %v54_v4  ;;  %v1247_v55 = vcombine.high %v906_v45, %v906_v45  ;;  %v1122_v39 = vmul.f32 %v909_v46, %v54_v4  ;;  %v1130_v40 = vmul.f32 %v918_v52, %v54_v4 }
  0x9e   :  { %1240 = vst [vmem:[#allocation13_spill] sm:$0xff] %v1098_v31  ;;  %v1103_v12 = vmul.f32 %v1241_v50, %v54_v4  ;;  %1243 = vst [vmem:[#allocation15_spill] sm:$0xff] %v1106_v32  ;;  %v1111_v28 = vmul.f32 %v1244_v51, %v54_v4  ;;  %v1250_v50 = vcombine.high %v909_v46, %v909_v46 }
  0x9f   :  { %1246 = vst [vmem:[#allocation17_spill] sm:$0xff] %v1114_v35  ;;  %v1119_v31 = vmul.f32 %v1247_v55, %v54_v4  ;;  %1249 = vst [vmem:[#allocation19_spill] sm:$0xff] %v1122_v39  ;;  %v1253_v51 = vcombine.high %v918_v52, %v918_v52  ;;  %v1138_v45 = vmul.f32 %v923_v56, %v54_v4 }
  0xa0   :  { %1242 = vst [vmem:[#allocation14_spill] sm:$0xff] %v1103_v12  ;;  %1245 = vst [vmem:[#allocation16_spill] sm:$0xff] %v1111_v28  ;;  %v1127_v32 = vmul.f32 %v1250_v50, %v54_v4  ;;  %v1256_v55 = vcombine.high %v923_v56, %v923_v56  ;;  %v454_v46 = vmul.f32 %v936_v6, %v276_v61 }
  0xa1   :  { %1248 = vst [vmem:[#allocation18_spill] sm:$0xff] %v1119_v31  ;;  %1252 = vst [vmem:[#allocation21_spill] sm:$0xff] %v1130_v40  ;;  %v1135_v35 = vmul.f32 %v1253_v51, %v54_v4  ;;  %v455_v50 = vmul.f32 %v301_v42, %v276_v61  ;;  %v457_v31 = vmul.f32 %v302_v47, %v276_v61 }
  0xa2   :  { %1251 = vst [vmem:[#allocation20_spill] sm:$0xff] %v1127_v32  ;;  %1255 = vst [vmem:[#allocation23_spill] sm:$0xff] %v1138_v45  ;;  %v1143_v39 = vmul.f32 %v1256_v55, %v54_v4  ;;  %v456_v32 = vmul.f32 %v941_v10, %v276_v61  ;;  %v458_v40 = vmul.f32 %v944_v11, %v276_v61 }
  0xa3   :  { %1254 = vst [vmem:[#allocation22_spill] sm:$0xff] %v1135_v35  ;;  %v459_v28 = vmul.f32 %v318_v48, %v276_v61  ;;  %v460_v52 = vmul.f32 %v947_v13, %v276_v61  ;;  %v461_v51 = vmul.f32 %v319_v53, %v276_v61  ;;  %v462_v35 = vmul.f32 %v950_v14, %v276_v61 }
  0xa4   :  { %v463_v45 = vmul.f32 %v335_v54, %v276_v61  ;;  %v464_v12 = vmul.f32 %v953_v15, %v276_v61  ;;  %v465_v56 = vmul.f32 %v336_v57, %v276_v61  ;;  %v466_v4 = vmul.f32 %v956_v16, %v276_v61 }
  0xa5   :  { %v467_v55 = vmul.f32 %v352_v58, %v276_v61  ;;  %v468_v6 = vmul.f32 %v959_v17, %v276_v61  ;;  %v469_v42 = vmul.f32 %v353_v59, %v276_v61  ;;  %v470_v10 = vmul.f32 %v962_v18, %v276_v61 }
  0xa6   :  { %v471_v47 = vmul.f32 %v369_v60, %v276_v61  ;;  %v472_v11 = vmul.f32 %v965_v19, %v276_v61  ;;  %v473_v48 = vmul.f32 %v370_v63, %v276_v61  ;;  %v474_v13 = vmul.f32 %v968_v22, %v276_v61 }
  0xa7   :  { %v475_v53 = vmul.f32 %v386_v0, %v276_v61  ;;  %v476_v14 = vmul.f32 %v971_v23, %v276_v61  ;;  %v477_v54 = vmul.f32 %v387_v3, %v276_v61  ;;  %v478_v15 = vmul.f32 %v974_v26, %v276_v61 }
  0xa8   :  { %v479_v57 = vmul.f32 %v403_v7, %v276_v61  ;;  %v480_v16 = vmul.f32 %v977_v29, %v276_v61  ;;  %v1257_v17 = vcombine.high %v977_v29, %v977_v29  ;;  %v482_v18 = vmul.f32 %v980_v36, %v276_v61 }
  0xa9   :  { %v1258_v19 = vcombine.high %v980_v36, %v980_v36  ;;  %v484_v22 = vmul.f32 %v983_v41, %v276_v61  ;;  %v1259_v23 = vcombine.high %v983_v41, %v983_v41  ;;  %v486_v26 = vadd.f32 %v454_v46, %v1018_v2 }
  0xaa   :  { %v481_v58 = vmul.f32 %v1257_v17, %v276_v61  ;;  %v487_v63 = vadd.f32 %v455_v50, %v1023_v1  ;;  %v488_v0 = vadd.f32 %v456_v32, %v1026_v62  ;;  %v489_v29 = vadd.f32 %v457_v31, %v1031_v8 }
  0xab   :  { %v483_v59 = vmul.f32 %v1258_v19, %v276_v61  ;;  %v485_v60 = vmul.f32 %v1259_v23, %v276_v61  ;;  %v490_v3 = vadd.f32 %v458_v40, %v1034_v9  ;;  %v491_v7 = vadd.f32 %v459_v28, %v1039_v5  ;;  %v1260_v28 = vld [vmem:[#allocation12_spill] sm:$0xff] }
  0xac   :  { %v492_v36 = vadd.f32 %v460_v52, %v1042_v20  ;;  %v493_v17 = vadd.f32 %v461_v51, %v1047_v33  ;;  %v494_v61 = vadd.f32 %v462_v35, %v1050_v24  ;;  %v495_v2 = vadd.f32 %v463_v45, %v1055_v37  ;;  %v1269_v52 = vld [vmem:[#allocation21_spill] sm:$0xff] }
  0xad   :  { %v496_v1 = vadd.f32 %v464_v12, %v1058_v21  ;;  %v497_v62 = vadd.f32 %v465_v56, %v1063_v34  ;;  %v498_v41 = vadd.f32 %v466_v4, %v1066_v27  ;;  %v499_v9 = vadd.f32 %v467_v55, %v1071_v43  ;;  %v1261_v12 = vld [vmem:[#allocation13_spill] sm:$0xff]  ;;  %v1262_v34 = vld [vmem:[#allocation14_spill] sm:$0xff]  ;;  %v1263_v27 = vld [vmem:[#allocation15_spill] sm:$0xff] }
  0xae   :  { %v500_v5 = vadd.f32 %v468_v6, %v1074_v25  ;;  %v501_v8 = vadd.f32 %v469_v42, %v1079_v38  ;;  %v502_v20 = vadd.f32 %v470_v10, %v1082_v30  ;;  %v503_v33 = vadd.f32 %v471_v47, %v1087_v49  ;;  %v1264_v43 = vld [vmem:[#allocation16_spill] sm:$0xff]  ;;  %v1265_v25 = vld [vmem:[#allocation17_spill] sm:$0xff]  ;;  %v1266_v38 = vld [vmem:[#allocation18_spill] sm:$0xff] }
  0xaf   :  { %v504_v24 = vadd.f32 %v472_v11, %v1260_v28  ;;  %v505_v37 = vadd.f32 %v473_v48, %v1095_v44  ;;  %v506_v21 = vadd.f32 %v474_v13, %v1261_v12  ;;  %v507_v31 = vadd.f32 %v475_v53, %v1262_v34  ;;  %v1267_v30 = vld [vmem:[#allocation19_spill] sm:$0xff]  ;;  %v1268_v49 = vld [vmem:[#allocation20_spill] sm:$0xff]  ;;  %v1270_v44 = vld [vmem:[#allocation22_spill] sm:$0xff] }
  0xb0   :  { %v508_v32 = vadd.f32 %v476_v14, %v1263_v27  ;;  %v509_v35 = vadd.f32 %v477_v54, %v1264_v43  ;;  %v510_v40 = vadd.f32 %v478_v15, %v1265_v25  ;;  %v511_v45 = vadd.f32 %v479_v57, %v1266_v38  ;;  %v1271_v4 = vld [vmem:[#allocation23_spill] sm:$0xff] }
  0xb1   :  { %v512_v46 = vadd.f32 %v480_v16, %v1267_v30  ;;  %v513_v50 = vadd.f32 %v481_v58, %v1268_v49  ;;  %v514_v51 = vadd.f32 %v482_v18, %v1269_v52  ;;  %v515_v56 = vadd.f32 %v483_v59, %v1270_v44  ;;  %v1272_v54 = vld [vmem:[#allocation11_spill] sm:$0xff] }
  0xb2   :  { %v516_v55 = vadd.f32 %v484_v22, %v1271_v4  ;;  %v517_v6 = vadd.f32 %v485_v60, %v1143_v39  ;;  %v550_v42 = vcombine.low %v486_v26, %v487_v63  ;;  %v551_v10 = vcombine.low %v488_v0, %v489_v29 }
  0xb3   :  { %v567_v47 = vcombine.low %v490_v3, %v491_v7  ;;  %v568_v11 = vcombine.low %v492_v36, %v493_v17  ;;  %v584_v48 = vcombine.low %v494_v61, %v495_v2  ;;  %v585_v13 = vcombine.low %v496_v1, %v497_v62 }
  0xb4   :  { %v601_v53 = vcombine.low %v498_v41, %v499_v9  ;;  %v602_v14 = vcombine.low %v500_v5, %v501_v8  ;;  %v558_v15 = vrot.slane %v550_v42, %v1272_v54  ;;  %v565_v57 = vrot.slane %v551_v10, %v1272_v54 }
  0xb5   :  { %v575_v16 = vrot.slane %v567_v47, %v1272_v54  ;;  %v582_v58 = vrot.slane %v568_v11, %v1272_v54  ;;  %v592_v18 = vrot.slane %v584_v48, %v1272_v54  ;;  %v599_v39 = vrot.slane %v585_v13, %v1272_v54 }
  0xb6   :  { %v609_v19 = vrot.slane %v601_v53, %v1272_v54  ;;  %v616_v59 = vrot.slane %v602_v14, %v1272_v54  ;;  %v566_v22 = vcombine.low %v558_v15, %v565_v57  ;;  %v618_v60 = vcombine.low %v502_v20, %v503_v33 }
  0xb7   :  { %v583_v23 = vcombine.low %v575_v16, %v582_v58  ;;  %v619_v26 = vcombine.low %v504_v24, %v505_v37  ;;  %v600_v0 = vcombine.low %v592_v18, %v599_v39  ;;  %v635_v3 = vcombine.low %v506_v21, %v507_v31 }
  0xb8   :  { %v617_v29 = vcombine.low %v609_v19, %v616_v59  ;;  %v636_v7 = vcombine.low %v508_v32, %v509_v35  ;;  %v626_v36 = vrot.slane %v618_v60, %v1272_v54  ;;  %v652_v61 = vcombine.low %v510_v40, %v511_v45  ;;  %694 = vst [vmem:[#allocation7] sm:$0xff] %v566_v22 }
  0xb9   :  { %v633_v17 = vrot.slane %v619_v26, %v1272_v54  ;;  %v653_v2 = vcombine.low %v512_v46, %v513_v50  ;;  %695 = vst [vmem:[#allocation7 + $0x8] sm:$0xff] %v583_v23  ;;  %v643_v1 = vrot.slane %v635_v3, %v1272_v54  ;;  %v669_v41 = vcombine.low %v514_v51, %v515_v56 }
  0xba   :  { %v650_v62 = vrot.slane %v636_v7, %v1272_v54  ;;  %v670_v9 = vcombine.low %v516_v55, %v517_v6  ;;  %696 = vst [vmem:[#allocation7 + $0x10] sm:$0xff] %v600_v0  ;;  %697 = vst [vmem:[#allocation7 + $0x18] sm:$0xff] %v617_v29  ;;  %v660_v8 = vrot.slane %v652_v61, %v1272_v54 }
  0xbb   :  { %v634_v5 = vcombine.low %v626_v36, %v633_v17  ;;  %v667_v20 = vrot.slane %v653_v2, %v1272_v54  ;;  %v677_v28 = vrot.slane %v669_v41, %v1272_v54 }
  0xbc   :  { %v651_v33 = vcombine.low %v643_v1, %v650_v62  ;;  %v684_v24 = vrot.slane %v670_v9, %v1272_v54 }
  0xbd   :  { %v668_v37 = vcombine.low %v660_v8, %v667_v20  ;;  %698 = vst [vmem:[#allocation7 + $0x20] sm:$0xff] %v634_v5 }
  0xbe   :  { %v685_v12 = vcombine.low %v677_v28, %v684_v24  ;;  %699 = vst [vmem:[#allocation7 + $0x28] sm:$0xff] %v651_v33 }
  0xbf   :  { %700 = vst [vmem:[#allocation7 + $0x30] sm:$0xff] %v668_v37 }
  0xc0   :  { %708 = vst.msk [vmem:[#allocation7 + $0x38] sm:$0xff] %vm707_vm6, %v685_v12 }
  0xc1   :  { %798 = shalt.err (!%p795_p0)
}
  0xc2   :  { %718 = dma.vmem_to_hbm [thread:$0]  %s716_s1, 1024, %s1235_s4, [#allocation4]  }
  0xc3   :  { %811 = dma.done.wait [#allocation4], 1024  }
  0xc4   :  { %812 = vsyncadd [#allocation4], 4294966272 }
  0xc5   :  { %722 = vsyncpa [#allocation3], 1 }
  0xc6   :  { %723 = vsyncpa [#allocation6], 1 }
  0xc7   :  { %724 = vsyncpa [#allocation4], 1 }

</bundles_post_ra>
